<compile_context>
chip_gen: v7x
topology: tpu7x:2x2x1
jax: 0.10.0
libtpu: 0.0.40
codegen_flags: <defaults>
</compile_context>

<pallas_src>
import jax
import jax.numpy as jnp
from jax import lax
from jax.experimental import pallas as pl
from jax.experimental.pallas import tpu as pltpu


def _round_up(x: int, m: int) -> int:
    return ((x + m - 1) // m) * m


def _pick_tile(n: int, candidates=(512, 256, 128)) -> int:
    """Pick the tile (lane multiple) minimizing padding; prefer larger on ties."""
    n = max(int(n), 1)
    best = candidates[0]
    for c in candidates:
        if _round_up(n, c) < _round_up(n, best):
            best = c
    return best


def _largest_divisor_tile(n_padded: int, candidates=(512, 256, 128)) -> int:
    for c in candidates:
        if n_padded % c == 0:
            return c
    return 128


def _matmul_kernel(a_ref, b_ref, o_ref):
    # Canonical (M, K) x (K, N) contraction: LHS last dim with RHS first dim.
    o_ref[...] = lax.dot_general(
        a_ref[...], b_ref[...],
        dimension_numbers=(((1,), (0,)), ((), ())),
        preferred_element_type=jnp.float32,
    ).astype(o_ref.dtype)


def _tiled_matmul(a, b, *, tm: int, tn: int, out_dtype):
    """C = A @ B with A (M, K), B (K, N); K is already 128-padded and kept whole."""
    M, K = a.shape
    Kb, N = b.shape
    assert K == Kb and M % tm == 0 and N % tn == 0

    bytes_accessed = int(
        M * K * a.dtype.itemsize
        + K * N * b.dtype.itemsize
        + M * N * jnp.dtype(out_dtype).itemsize
    )
    cost = pl.CostEstimate(
        flops=int(2 * M * N * K), transcendentals=0, bytes_accessed=bytes_accessed
    )

    return pl.pallas_call(
        _matmul_kernel,
        out_shape=jax.ShapeDtypeStruct((M, N), out_dtype),
        grid_spec=pltpu.PrefetchScalarGridSpec(
            num_scalar_prefetch=0,
            grid=(M // tm, N // tn),
            in_specs=[
                pl.BlockSpec((tm, K), lambda i, j: (i, 0)),
                pl.BlockSpec((K, tn), lambda i, j: (0, j)),
            ],
            out_specs=pl.BlockSpec((tm, tn), lambda i, j: (i, j)),
        ),
        compiler_params=pltpu.CompilerParams(
            dimension_semantics=("parallel", "parallel"),
            vmem_limit_bytes=48 * 1024 * 1024,
        ),
        cost_estimate=cost,
    )(a, b)


def bilinear_score(query_embed, demon_embed, wq, wd, *, tb_max: int = 128):
    """score = (query_embed @ wq.T) @ (demon_embed @ wd.T).T  -> (B, N) f32."""
    B, Dq = query_embed.shape
    N, Dd = demon_embed.shape
    H, Dq_w = wq.shape
    H_w, Dd_w = wd.shape
    assert Dq_w == Dq and Dd_w == Dd and H_w == H

    # --- tile / padded sizes --------------------------------------------------
    tb = min(_round_up(B, 8), tb_max)          # sublane-aligned B tile
    tn = _pick_tile(N)                         # lane tile minimizing N padding
    B_p = _round_up(B, tb)
    N_p = _round_up(N, tn)
    Dq_p = _round_up(Dq, 128)
    Dd_p = _round_up(Dd, 128)
    H_p = _round_up(H, 128)
    th = _largest_divisor_tile(H_p)            # row tile for the d-projection

    # --- wrapper-side padding / transposes / bf16 casts (layout plumbing) ----
    bf16 = jnp.bfloat16
    q_p = jnp.pad(query_embed, ((0, B_p - B), (0, Dq_p - Dq))).astype(bf16)
    wq_t = jnp.pad(wq.T, ((0, Dq_p - Dq), (0, H_p - H))).astype(bf16)          # (Dq_p, H_p)
    wd_p = jnp.pad(wd, ((0, H_p - H), (0, Dd_p - Dd))).astype(bf16)            # (H_p, Dd_p)
    d_t = jnp.pad(demon_embed.T, ((0, Dd_p - Dd), (0, N_p - N))).astype(bf16)  # (Dd_p, N_p)

    # Phase 1: d_projT = Wd @ D.T  -> (H_p, N_p), computed exactly once.
    d_projT = _tiled_matmul(wd_p, d_t, tm=th, tn=tn, out_dtype=bf16)

    # Phase 2: q_proj = Q @ Wq.T   -> (B_p, H_p), tiny GEMM, computed once.
    q_proj = _tiled_matmul(q_p, wq_t, tm=tb, tn=th, out_dtype=bf16)

    # Phase 3: score = q_proj @ d_projT -> (B_p, N_p) f32, plain tiled GEMM.
    score = _tiled_matmul(q_proj, d_projT, tm=tb, tn=tn, out_dtype=jnp.float32)

    return score[:B, :N]


if __name__ == "__main__":
    # Small shapes consistent with the module's forward (exercise padding paths).
    B = 4             # number of queries
    N = 10            # number of demonstrations
    query_dim = 24
    demon_dim = 40
    hidden_dim = 48

    key = jax.random.PRNGKey(0)
    k1, k2, k3, k4 = jax.random.split(key, 4)

    query_embed = jax.random.normal(k1, (B, query_dim), dtype=jnp.float32)
    demon_embed = jax.random.normal(k2, (N, demon_dim), dtype=jnp.float32)

    # Deterministic parameter init (nn.Linear weight shapes: (out, in)).
    wq = jax.random.normal(k3, (hidden_dim, query_dim), dtype=jnp.float32) * 0.05
    wd = jax.random.normal(k4, (hidden_dim, demon_dim), dtype=jnp.float32) * 0.05

    score = jax.jit(bilinear_score)(query_embed, demon_embed, wq, wd)
    jax.block_until_ready(score)

    # Reference matching the kernel's bf16-input / f32-accumulate math.
    qp = jnp.dot(query_embed.astype(jnp.bfloat16), wq.T.astype(jnp.bfloat16),
                 preferred_element_type=jnp.float32).astype(jnp.bfloat16)
    dp = jnp.dot(demon_embed.astype(jnp.bfloat16), wd.T.astype(jnp.bfloat16),
                 preferred_element_type=jnp.float32).astype(jnp.bfloat16)
    ref_bf16 = jnp.dot(qp, dp.T, preferred_element_type=jnp.float32)
    # Full-f32 module reference (loose tolerance covers bf16 rounding).
    ref_f32 = (query_embed @ wq.T) @ (demon_embed @ wd.T).T

    assert score.shape == (B, N)
    assert jnp.allclose(score, ref_bf16, atol=2e-2, rtol=2e-2)
    assert jnp.allclose(score, ref_f32, atol=5e-2, rtol=5e-2)

    print("KERNEL_OK")
</pallas_src>

<mosaic_0001>
module attributes {stable_mosaic.version = 11 : i64} {
  func.func @_matmul_kernel(%arg0: i32, %arg1: i32, %arg2: memref<8x128xbf16, #tpu.memory_space<vmem>>, %arg3: memref<128x128xbf16, #tpu.memory_space<vmem>>, %arg4: memref<8x128xbf16, #tpu.memory_space<vmem>>) attributes {dimension_semantics = [#tpu.dimension_semantics<parallel>, #tpu.dimension_semantics<parallel>], iteration_bounds = array<i64: 1, 1>, scalar_prefetch = 0 : i64, scratch_operands = 0 : i64, tpu.core_type = #tpu.core_type<tc>, window_params = [{transform_indices = @transform_0, window_bounds = array<i64: 8, 128>}, {transform_indices = @transform_1, window_bounds = array<i64: 128, 128>}, {transform_indices = @transform_2, window_bounds = array<i64: 8, 128>}]} {
    %c0 = arith.constant 0 : index
    %c0_0 = arith.constant 0 : index
    %0 = vector.load %arg2[%c0, %c0_0] : memref<8x128xbf16, #tpu.memory_space<vmem>>, vector<8x128xbf16>
    %c0_1 = arith.constant 0 : index
    %c0_2 = arith.constant 0 : index
    %1 = vector.load %arg3[%c0_1, %c0_2] : memref<128x128xbf16, #tpu.memory_space<vmem>>, vector<128x128xbf16>
    %cst = arith.constant dense<0.000000e+00> : vector<8x128xf32>
    %2 = tpu.matmul %0, %1, %cst {dimension_numbers = #tpu.dot_dimension_numbers<[1], [0], [0], [1], [0, 0, 1, 1], [], []>} : vector<8x128xbf16>, vector<128x128xbf16>, vector<8x128xf32> -> vector<8x128xf32>
    %3 = arith.truncf %2 : vector<8x128xf32> to vector<8x128xbf16>
    %c0_3 = arith.constant 0 : index
    %c0_4 = arith.constant 0 : index
    %4 = vector.load %arg4[%c0_3, %c0_4] : memref<8x128xbf16, #tpu.memory_space<vmem>>, vector<8x128xbf16>
    tpu.vector_store %arg4[%c0_3, %c0_4], %3 {strides = array<i32>} : memref<8x128xbf16, #tpu.memory_space<vmem>>, vector<8x128xbf16>,
    return
  }
  func.func @transform_0(%arg0: i32, %arg1: i32) -> (i32, i32) {
    %c0_i32 = arith.constant 0 : i32
    %c0_i32_0 = arith.constant 0 : i32
    return %arg0, %c0_i32 : i32, i32
  }
  func.func @transform_1(%arg0: i32, %arg1: i32) -> (i32, i32) {
    %c0_i32 = arith.constant 0 : i32
    %c0_i32_0 = arith.constant 0 : i32
    return %c0_i32, %arg1 : i32, i32
  }
  func.func @transform_2(%arg0: i32, %arg1: i32) -> (i32, i32) {
    %c0_i32 = arith.constant 0 : i32
    return %arg0, %arg1 : i32, i32
  }
}

module attributes {stable_mosaic.version = 11 : i64} {
  func.func @_matmul_kernel(%arg0: i32, %arg1: i32, %arg2: memref<128x128xbf16, #tpu.memory_space<vmem>>, %arg3: memref<128x128xbf16, #tpu.memory_space<vmem>>, %arg4: memref<128x128xbf16, #tpu.memory_space<vmem>>) attributes {dimension_semantics = [#tpu.dimension_semantics<parallel>, #tpu.dimension_semantics<parallel>], iteration_bounds = array<i64: 1, 1>, scalar_prefetch = 0 : i64, scratch_operands = 0 : i64, tpu.core_type = #tpu.core_type<tc>, window_params = [{transform_indices = @transform_0, window_bounds = array<i64: 128, 128>}, {transform_indices = @transform_1, window_bounds = array<i64: 128, 128>}, {transform_indices = @transform_2, window_bounds = array<i64: 128, 128>}]} {
    %c0 = arith.constant 0 : index
    %c0_0 = arith.constant 0 : index
    %0 = vector.load %arg2[%c0, %c0_0] : memref<128x128xbf16, #tpu.memory_space<vmem>>, vector<128x128xbf16>
    %c0_1 = arith.constant 0 : index
    %c0_2 = arith.constant 0 : index
    %1 = vector.load %arg3[%c0_1, %c0_2] : memref<128x128xbf16, #tpu.memory_space<vmem>>, vector<128x128xbf16>
    %cst = arith.constant dense<0.000000e+00> : vector<128x128xf32>
    %2 = tpu.matmul %0, %1, %cst {dimension_numbers = #tpu.dot_dimension_numbers<[1], [0], [0], [1], [0, 0, 1, 1], [], []>} : vector<128x128xbf16>, vector<128x128xbf16>, vector<128x128xf32> -> vector<128x128xf32>
    %3 = arith.truncf %2 : vector<128x128xf32> to vector<128x128xbf16>
    %c0_3 = arith.constant 0 : index
    %c0_4 = arith.constant 0 : index
    %4 = vector.load %arg4[%c0_3, %c0_4] : memref<128x128xbf16, #tpu.memory_space<vmem>>, vector<128x128xbf16>
    tpu.vector_store %arg4[%c0_3, %c0_4], %3 {strides = array<i32>} : memref<128x128xbf16, #tpu.memory_space<vmem>>, vector<128x128xbf16>,
    return
  }
  func.func @transform_0(%arg0: i32, %arg1: i32) -> (i32, i32) {
    %c0_i32 = arith.constant 0 : i32
    %c0_i32_0 = arith.constant 0 : i32
    return %arg0, %c0_i32 : i32, i32
  }
  func.func @transform_1(%arg0: i32, %arg1: i32) -> (i32, i32) {
    %c0_i32 = arith.constant 0 : i32
    %c0_i32_0 = arith.constant 0 : i32
    return %c0_i32, %arg1 : i32, i32
  }
  func.func @transform_2(%arg0: i32, %arg1: i32) -> (i32, i32) {
    %c0_i32 = arith.constant 0 : i32
    return %arg0, %arg1 : i32, i32
  }
}

module attributes {stable_mosaic.version = 11 : i64} {
  func.func @_matmul_kernel(%arg0: i32, %arg1: i32, %arg2: memref<8x128xbf16, #tpu.memory_space<vmem>>, %arg3: memref<128x128xbf16, #tpu.memory_space<vmem>>, %arg4: memref<8x128xf32, #tpu.memory_space<vmem>>) attributes {dimension_semantics = [#tpu.dimension_semantics<parallel>, #tpu.dimension_semantics<parallel>], iteration_bounds = array<i64: 1, 1>, scalar_prefetch = 0 : i64, scratch_operands = 0 : i64, tpu.core_type = #tpu.core_type<tc>, window_params = [{transform_indices = @transform_0, window_bounds = array<i64: 8, 128>}, {transform_indices = @transform_1, window_bounds = array<i64: 128, 128>}, {transform_indices = @transform_2, window_bounds = array<i64: 8, 128>}]} {
    %c0 = arith.constant 0 : index
    %c0_0 = arith.constant 0 : index
    %0 = vector.load %arg2[%c0, %c0_0] : memref<8x128xbf16, #tpu.memory_space<vmem>>, vector<8x128xbf16>
    %c0_1 = arith.constant 0 : index
    %c0_2 = arith.constant 0 : index
    %1 = vector.load %arg3[%c0_1, %c0_2] : memref<128x128xbf16, #tpu.memory_space<vmem>>, vector<128x128xbf16>
    %cst = arith.constant dense<0.000000e+00> : vector<8x128xf32>
    %2 = tpu.matmul %0, %1, %cst {dimension_numbers = #tpu.dot_dimension_numbers<[1], [0], [0], [1], [0, 0, 1, 1], [], []>} : vector<8x128xbf16>, vector<128x128xbf16>, vector<8x128xf32> -> vector<8x128xf32>
    %c0_3 = arith.constant 0 : index
    %c0_4 = arith.constant 0 : index
    %3 = vector.load %arg4[%c0_3, %c0_4] : memref<8x128xf32, #tpu.memory_space<vmem>>, vector<8x128xf32>
    tpu.vector_store %arg4[%c0_3, %c0_4], %2 {strides = array<i32>} : memref<8x128xf32, #tpu.memory_space<vmem>>, vector<8x128xf32>,
    return
  }
  func.func @transform_0(%arg0: i32, %arg1: i32) -> (i32, i32) {
    %c0_i32 = arith.constant 0 : i32
    %c0_i32_0 = arith.constant 0 : i32
    return %arg0, %c0_i32 : i32, i32
  }
  func.func @transform_1(%arg0: i32, %arg1: i32) -> (i32, i32) {
    %c0_i32 = arith.constant 0 : i32
    %c0_i32_0 = arith.constant 0 : i32
    return %c0_i32, %arg1 : i32, i32
  }
  func.func @transform_2(%arg0: i32, %arg1: i32) -> (i32, i32) {
    %c0_i32 = arith.constant 0 : i32
    return %arg0, %arg1 : i32, i32
  }
}

</mosaic_0001>

<bundles_post_ra>
// kernel: bilinear_score.5
= control target key start
LH: loop header
LB: loop body
LE: loop exit
PB: predicated region body
PF: predicated region fallthrough
CT: control target
= control target key end

     0   :  { %v169_v0 = vmov 0.0   ;;  %vm170_vm0 = vmmov 0   ;;  %s216_s1 = inlined_call_operand.vmem [shape: bf16[128,128], index: 1, kind: input, shape index: {}]   ;;  %s217_s0 = inlined_call_operand.vmem [shape: bf16[8,128], index: 0, kind: input, shape index: {}]   ;;  %s218_s2 = inlined_call_operand.vmem [shape: f32[8,128], index: 2, kind: output, shape index: {}]  }
   0x1   :  { %139 = vmatprep.subr.bf16.mxu0 %v169_v0  ;;  %v161_v1 = vld [vmem:[%s216_s1] sm:$0xff]   ;;  %155 = vmatprep.mubr.msk.bf16.mxu0 %vm170_vm0, %v169_v0  ;;  %v162_v2 = vld [vmem:[%s216_s1 + $0x8] sm:$0xff]   ;;  %v163_v3 = vld [vmem:[%s216_s1 + $0x10] sm:$0xff]  }
   0x2   :  { %140 = vmatpush3.bf16.msra.mxu0 %v161_v1  ;;  %v164_v4 = vld [vmem:[%s216_s1 + $0x18] sm:$0xff]   ;;  %v165_v5 = vld [vmem:[%s216_s1 + $0x20] sm:$0xff]   ;;  %v166_v6 = vld [vmem:[%s216_s1 + $0x28] sm:$0xff]  }
   0x3   :  { %141 = vmatprep.subr.bf16.mxu0 %v169_v0  ;;  %v167_v7 = vld [vmem:[%s216_s1 + $0x30] sm:$0xff]   ;;  %v168_v8 = vld [vmem:[%s216_s1 + $0x38] sm:$0xff]   ;;  %v12_v9 = vld [vmem:[%s217_s0] sm:$0xf] }
   0x6   :  { %142 = vmatpush3.bf16.msra.mxu0 %v162_v2 }
   0x7   :  { %143 = vmatprep.subr.bf16.mxu0 %v169_v0 }
   0xa   :  { %144 = vmatpush3.bf16.msra.mxu0 %v163_v3 }
   0xb   :  { %145 = vmatprep.subr.bf16.mxu0 %v169_v0 }
   0xe   :  { %146 = vmatpush3.bf16.msra.mxu0 %v164_v4 }
   0xf   :  { %147 = vmatprep.subr.bf16.mxu0 %v169_v0 }
  0x12   :  { %148 = vmatpush3.bf16.msra.mxu0 %v165_v5 }
  0x13   :  { %149 = vmatprep.subr.bf16.mxu0 %v169_v0 }
  0x16   :  { %150 = vmatpush3.bf16.msra.mxu0 %v166_v6 }
  0x17   :  { %151 = vmatprep.subr.bf16.mxu0 %v169_v0 }
  0x1a   :  { %152 = vmatpush3.bf16.msra.mxu0 %v167_v7 }
  0x1b   :  { %153 = vmatprep.subr.bf16.mxu0 %v169_v0 }
  0x1e   :  { %154 = vmatpush3.bf16.msra.mxu0 %v168_v8 }
  0x21   :  { %156 = vmatmul.mubr.bf16.vlgmr.msra.gmra.mrb[0].mxu0 %v12_v9 }
  0xf4   :  { %v111_v10 = vpop.f32.mrb[0].mxu0 }
  0xf5   :  { %117 = vst [vmem:[%s218_s2] sm:$0xff] %v111_v10  ;;  %v157_v11 = vpop.f32.mrb[1].mxu0 }
  0xf6   :  { %v114_v12 = vpop.f32.mrb[2].mxu0 }
  0xf7   :  { %v158_v13 = vpop.f32.mrb[3].mxu0 }

// kernel: bilinear_score.4
= control target key start
LH: loop header
LB: loop body
LE: loop exit
PB: predicated region body
PF: predicated region fallthrough
CT: control target
= control target key end

     0   :  { %v170_v0 = vmov 0.0   ;;  %vm171_vm0 = vmmov 0   ;;  %s217_s1 = inlined_call_operand.vmem [shape: bf16[128,128], index: 1, kind: input, shape index: {}]   ;;  %s218_s0 = inlined_call_operand.vmem [shape: bf16[8,128], index: 0, kind: input, shape index: {}]   ;;  %s219_s2 = inlined_call_operand.vmem [shape: bf16[8,128], index: 2, kind: output, shape index: {}]  }
   0x1   :  { %140 = vmatprep.subr.bf16.mxu0 %v170_v0  ;;  %v162_v1 = vld [vmem:[%s217_s1] sm:$0xff]   ;;  %156 = vmatprep.mubr.msk.bf16.mxu0 %vm171_vm0, %v170_v0  ;;  %v163_v2 = vld [vmem:[%s217_s1 + $0x8] sm:$0xff]   ;;  %v164_v3 = vld [vmem:[%s217_s1 + $0x10] sm:$0xff]  }
   0x2   :  { %141 = vmatpush3.bf16.msra.mxu0 %v162_v1  ;;  %v165_v4 = vld [vmem:[%s217_s1 + $0x18] sm:$0xff]   ;;  %v166_v5 = vld [vmem:[%s217_s1 + $0x20] sm:$0xff]   ;;  %v167_v6 = vld [vmem:[%s217_s1 + $0x28] sm:$0xff]  }
   0x3   :  { %142 = vmatprep.subr.bf16.mxu0 %v170_v0  ;;  %v168_v7 = vld [vmem:[%s217_s1 + $0x30] sm:$0xff]   ;;  %v169_v8 = vld [vmem:[%s217_s1 + $0x38] sm:$0xff]   ;;  %v12_v9 = vld [vmem:[%s218_s0] sm:$0xf] }
   0x6   :  { %143 = vmatpush3.bf16.msra.mxu0 %v163_v2 }
   0x7   :  { %144 = vmatprep.subr.bf16.mxu0 %v170_v0 }
   0xa   :  { %145 = vmatpush3.bf16.msra.mxu0 %v164_v3 }
   0xb   :  { %146 = vmatprep.subr.bf16.mxu0 %v170_v0 }
   0xe   :  { %147 = vmatpush3.bf16.msra.mxu0 %v165_v4 }
   0xf   :  { %148 = vmatprep.subr.bf16.mxu0 %v170_v0 }
  0x12   :  { %149 = vmatpush3.bf16.msra.mxu0 %v166_v5 }
  0x13   :  { %150 = vmatprep.subr.bf16.mxu0 %v170_v0 }
  0x16   :  { %151 = vmatpush3.bf16.msra.mxu0 %v167_v6 }
  0x17   :  { %152 = vmatprep.subr.bf16.mxu0 %v170_v0 }
  0x1a   :  { %153 = vmatpush3.bf16.msra.mxu0 %v168_v7 }
  0x1b   :  { %154 = vmatprep.subr.bf16.mxu0 %v170_v0 }
  0x1e   :  { %155 = vmatpush3.bf16.msra.mxu0 %v169_v8 }
  0x21   :  { %157 = vmatmul.mubr.bf16.vlgmr.msra.gmra.mrb[0].mxu0 %v12_v9 }
  0xf4   :  { %v111_v10 = vpop.f32.mrb[0].mxu0 }
  0xf5   :  { %v117_v11 = vpack.c.bf16 %v111_v10, %v111_v10  ;;  %v158_v12 = vpop.f32.mrb[1].mxu0 }
  0xf6   :  { %v114_v13 = vpop.f32.mrb[2].mxu0 }
  0xf7   :  { %118 = vst [vmem:[%s219_s2] sm:$0xf] %v117_v11  ;;  %v159_v14 = vpop.f32.mrb[3].mxu0 }

// kernel: bilinear_score.3
= control target key start
LH: loop header
LB: loop body
LE: loop exit
PB: predicated region body
PF: predicated region fallthrough
CT: control target
= control target key end

     0   :  { %s583_s1 = inlined_call_operand.vmem [shape: bf16[128,128], index: 1, kind: input, shape index: {}]   ;;  %s584_s0 = inlined_call_operand.vmem [shape: bf16[128,128], index: 0, kind: input, shape index: {}]   ;;  %s585_s2 = inlined_call_operand.vmem [shape: bf16[128,128], index: 2, kind: output, shape index: {}]  }
   0x1   :  { %v480_v0 = vld [vmem:[%s583_s1] sm:$0xff]   ;;  %v481_v1 = vld [vmem:[%s583_s1 + $0x8] sm:$0xff]   ;;  %v482_v2 = vld [vmem:[%s583_s1 + $0x10] sm:$0xff]  }
   0x2   :  { %432 = vmatprep.subr.bf16.mxu0 %v480_v0  ;;  %464 = vmatprep.subr.bf16.mxu1 %v480_v0  ;;  %v483_v3 = vld [vmem:[%s583_s1 + $0x18] sm:$0xff]   ;;  %v488_v4 = vld [vmem:[%s584_s0] sm:$0xff]   ;;  %v485_v7 = vld [vmem:[%s583_s1 + $0x28] sm:$0xff]  }
   0x3   :  { %433 = vmatpush3.bf16.msra.mxu0 %v480_v0  ;;  %472 = vmatpush3.bf16.msra.mxu1 %v480_v0  ;;  %v489_v5 = vld [vmem:[%s584_s0 + $0x20] sm:$0xff]   ;;  %v486_v8 = vld [vmem:[%s583_s1 + $0x30] sm:$0xff]   ;;  %v487_v9 = vld [vmem:[%s583_s1 + $0x38] sm:$0xff]  }
   0x4   :  { %434 = vmatprep.subr.bf16.mxu0 %v481_v1  ;;  %465 = vmatprep.subr.bf16.mxu1 %v481_v1  ;;  %v484_v6 = vld [vmem:[%s583_s1 + $0x20] sm:$0xff]   ;;  %v490_v10 = vld [vmem:[%s584_s0 + $0x8] sm:$0xff]   ;;  %v492_v12 = vld [vmem:[%s584_s0 + $0x10] sm:$0xff]  }
   0x5   :  { %448 = vmatprep.mubr.bf16.mxu0 %v488_v4  ;;  %456 = vmatprep.mubr.bf16.mxu1 %v489_v5  ;;  %v491_v11 = vld [vmem:[%s584_s0 + $0x28] sm:$0xff]   ;;  %v493_v13 = vld [vmem:[%s584_s0 + $0x30] sm:$0xff]   ;;  %v494_v14 = vld [vmem:[%s584_s0 + $0x18] sm:$0xff]  }
   0x6   :  { %v495_v15 = vld [vmem:[%s584_s0 + $0x38] sm:$0xff]  }
   0x7   :  { %435 = vmatpush3.bf16.msra.mxu0 %v481_v1  ;;  %473 = vmatpush3.bf16.msra.mxu1 %v481_v1 }
   0x8   :  { %436 = vmatprep.subr.bf16.mxu0 %v482_v2  ;;  %466 = vmatprep.subr.bf16.mxu1 %v482_v2 }
   0xb   :  { %437 = vmatpush3.bf16.msra.mxu0 %v482_v2  ;;  %474 = vmatpush3.bf16.msra.mxu1 %v482_v2 }
   0xc   :  { %438 = vmatprep.subr.bf16.mxu0 %v483_v3  ;;  %467 = vmatprep.subr.bf16.mxu1 %v483_v3 }
   0xf   :  { %439 = vmatpush3.bf16.msra.mxu0 %v483_v3  ;;  %475 = vmatpush3.bf16.msra.mxu1 %v483_v3 }
  0x10   :  { %440 = vmatprep.subr.bf16.mxu0 %v484_v6  ;;  %468 = vmatprep.subr.bf16.mxu1 %v484_v6 }
  0x13   :  { %441 = vmatpush3.bf16.msra.mxu0 %v484_v6  ;;  %476 = vmatpush3.bf16.msra.mxu1 %v484_v6 }
  0x14   :  { %442 = vmatprep.subr.bf16.mxu0 %v485_v7  ;;  %469 = vmatprep.subr.bf16.mxu1 %v485_v7 }
  0x17   :  { %443 = vmatpush3.bf16.msra.mxu0 %v485_v7  ;;  %477 = vmatpush3.bf16.msra.mxu1 %v485_v7 }
  0x18   :  { %444 = vmatprep.subr.bf16.mxu0 %v486_v8  ;;  %470 = vmatprep.subr.bf16.mxu1 %v486_v8 }
  0x1b   :  { %445 = vmatpush3.bf16.msra.mxu0 %v486_v8  ;;  %478 = vmatpush3.bf16.msra.mxu1 %v486_v8 }
  0x1c   :  { %446 = vmatprep.subr.bf16.mxu0 %v487_v9  ;;  %471 = vmatprep.subr.bf16.mxu1 %v487_v9 }
  0x1f   :  { %447 = vmatpush3.bf16.msra.mxu0 %v487_v9  ;;  %479 = vmatpush3.bf16.msra.mxu1 %v487_v9 }
  0x22   :  { %449 = vmatmul.mubr.bf16.vlgmr.msra.gmra.mrb[0].mxu0 %v490_v10  ;;  %457 = vmatmul.mubr.bf16.vlgmr.msra.gmra.mrb[0].mxu1 %v491_v11 }
  0x23   :  { %452 = vmatprep.mubr.bf16.mxu0 %v492_v12  ;;  %460 = vmatprep.mubr.bf16.mxu1 %v493_v13 }
  0x2a   :  { %453 = vmatmul.mubr.bf16.gmra.mrb[4].mxu0 %v494_v14  ;;  %461 = vmatmul.mubr.bf16.gmra.mrb[4].mxu1 %v495_v15 }
  0xf5   :  { %v450_v16 = vpop.f32.mrb[0].mxu0  ;;  %v458_v17 = vpop.f32.mrb[0].mxu1 }
  0xf6   :  { %v174_v18 = vpop.f32.mrb[1].mxu0  ;;  %v206_v19 = vpop.f32.mrb[1].mxu1 }
  0xf7   :  { %v451_v20 = vpop.f32.mrb[2].mxu0  ;;  %v459_v21 = vpop.f32.mrb[2].mxu1 }
  0xf8   :  { %v377_v22 = vpack.c.bf16 %v451_v20, %v450_v16  ;;  %v397_v23 = vpack.c.bf16 %v459_v21, %v458_v17  ;;  %v177_v24 = vpop.f32.mrb[3].mxu0  ;;  %v209_v25 = vpop.f32.mrb[3].mxu1 }
  0xf9   :  { %v372_v26 = vpack.c.bf16 %v177_v24, %v174_v18  ;;  %v392_v27 = vpack.c.bf16 %v209_v25, %v206_v19 }
  0xfa   :  { %409 = vst [vmem:[%s585_s2 + $0x8] sm:$0xff] %v377_v22   ;;  %413 = vst [vmem:[%s585_s2 + $0x28] sm:$0xff] %v397_v23  }
  0xfb   :  { %373 = vst [vmem:[%s585_s2] sm:$0xff] %v372_v26   ;;  %412 = vst [vmem:[%s585_s2 + $0x20] sm:$0xff] %v392_v27  }
  0xfd   :  { %v454_v28 = vpop.f32.mrb[4].mxu0  ;;  %v462_v29 = vpop.f32.mrb[4].mxu1 }
  0xfe   :  { %v190_v30 = vpop.f32.mrb[5].mxu0  ;;  %v222_v31 = vpop.f32.mrb[5].mxu1 }
  0xff   :  { %v455_v32 = vpop.f32.mrb[6].mxu0  ;;  %v463_v33 = vpop.f32.mrb[6].mxu1 }
 0x100   :  { %v387_v34 = vpack.c.bf16 %v455_v32, %v454_v28  ;;  %v407_v35 = vpack.c.bf16 %v463_v33, %v462_v29  ;;  %v193_v36 = vpop.f32.mrb[7].mxu0  ;;  %v225_v37 = vpop.f32.mrb[7].mxu1 }
 0x101   :  { %v382_v38 = vpack.c.bf16 %v193_v36, %v190_v30  ;;  %v402_v39 = vpack.c.bf16 %v225_v37, %v222_v31 }
 0x102   :  { %411 = vst [vmem:[%s585_s2 + $0x18] sm:$0xff] %v387_v34   ;;  %415 = vst [vmem:[%s585_s2 + $0x38] sm:$0xff] %v407_v35  }
 0x103   :  { %410 = vst [vmem:[%s585_s2 + $0x10] sm:$0xff] %v382_v38   ;;  %414 = vst [vmem:[%s585_s2 + $0x30] sm:$0xff] %v402_v39  }

</bundles_post_ra>
